<compile_context>
chip_gen: v6e
topology: v6e:2x2x1
jax: 0.10.0
libtpu: 0.0.40
codegen_flags: <defaults>
</compile_context>

<pallas_src>
import functools
import math

import jax
import jax.numpy as jnp
from jax.experimental import pallas as pl
from jax.experimental.pallas import tpu as pltpu


def _round_up(x, n):
    return ((x + n - 1) // n) * n


# ----------------------------------------------------------------------------
# Pallas kernel
# ----------------------------------------------------------------------------
def _mean_vector_kernel(f_ref, out_ref, *, m, tm, n_tiles_total):
    """Fold one (C, tm) tile into the resident (C, 1) fp32 partial-sum block."""
    i = pl.program_id(0)      # split index ("parallel": one per TC on v7x)
    k = pl.program_id(1)      # tile index inside this split ("arbitrary")
    nk = pl.num_programs(1)

    @pl.when(k == 0)
    def _init():
        out_ref[...] = jnp.zeros_like(out_ref)

    # Native-dtype DMA; cast to fp32 on the VPU (hides under the HBM stream).
    f = f_ref[...].astype(jnp.float32)

    def _accumulate(tile):
        # Lane-tile folds (VALU) + a single cross-lane reduce (XLU) -> (C, 1).
        # The tiny resident output block is the accumulator: no (C, tm) scratch,
        # no full-width VMEM load/store per step.
        out_ref[...] += jnp.sum(tile, axis=1, keepdims=True)

    if m % tm == 0:
        # Every tile is full: zero mask work in the hot loop.
        _accumulate(f)
    else:
        g = i * nk + k        # global tile index along the flattened m axis

        @pl.when(g != n_tiles_total - 1)
        def _full_tile():
            _accumulate(f)

        @pl.when(g == n_tiles_total - 1)
        def _partial_tile():
            # Padded lanes of the last tile are undefined (may cast to NaN),
            # so they MUST be masked to zero before accumulating.
            lane = jax.lax.broadcasted_iota(jnp.int32, (1, tm), 1)
            valid = lane < (m - g * tm)
            _accumulate(jnp.where(valid, f, 0.0))


# ----------------------------------------------------------------------------
# Wrapper: MeanVector forward
# ----------------------------------------------------------------------------
def _tpu_vmem_capacity_bytes():
    try:
        cap = getattr(pltpu.get_tpu_info(), "vmem_capacity_bytes", None)
        if cap:
            return int(cap)
    except Exception:
        pass
    return 64 << 20    # unknown -> assume the smallest (v7x-like) VMEM


def mean_vector_pallas(source_nchw, *, max_tile_m=None):
    """source_nchw: (1, C, H, W) -> per-channel mean, shape (C,), input dtype."""
    one, c, h, w = source_nchw.shape
    assert one == 1, "MeanVector expects a single image (batch == 1)"
    m = h * w

    # Same memory order as torch .view(n_filter, m); keep native dtype in HBM.
    x = source_nchw.reshape(c, m)
    itemsize = jnp.dtype(x.dtype).itemsize

    # ---- small-C sublane packing (free, layout-preserving reshape) ----------
    g = 1
    if c < 8:
        g0 = 8 // math.gcd(c, 8)          # smallest g making c*g a multiple of 8
        if g0 > 1 and m % g0 == 0:
            g = g0
    c_eff = c * g
    m_eff = m // g
    F = x.reshape(c_eff, m_eff)

    # ---- generation-aware DMA-tile / VMEM budgets ----------------------------
    vmem_cap = _tpu_vmem_capacity_bytes()
    if vmem_cap >= (100 << 20):           # v5e / v6e: 128 MiB VMEM
        target_dma_bytes = 2 << 20        # 2 MiB tiles amortize ~0.35us step cost
        vmem_budget = 64 << 20
    else:                                 # v7x: 64 MiB VMEM, 3.2 TB/s HBM
        target_dma_bytes = 4 << 20
        vmem_budget = 24 << 20
    nbuf = 3                              # triple-buffer the input stream

    # ---- tile-size selection --------------------------------------------------
    m_padded = _round_up(m_eff, 128)
    tm = _round_up(-(-target_dma_bytes // (c_eff * itemsize)), 128)
    tm_cap = vmem_budget // (nbuf * c_eff * itemsize)   # no fp32-acc term anymore
    tm_cap = max(128, (tm_cap // 128) * 128)
    tm = max(128, min(tm, tm_cap, m_padded))
    if max_tile_m is not None:            # test hook: force a multi-tile grid
        tm = max(128, min(tm, _round_up(max_tile_m, 128)))

    n_tiles_total = pl.cdiv(m_eff, tm)

    # Leading "parallel" axis: two independent partial sums so both v7x
    # TensorCores stream HBM; harmless sequential loop on 1-TC v5e/v6e.
    n_split = 2 if (n_tiles_total >= 4 and n_tiles_total % 2 == 0) else 1
    nk = n_tiles_total // n_split

    buf_bytes = nbuf * c_eff * tm * itemsize
    vmem_limit = int(min(max(32 << 20, buf_bytes + (8 << 20)),
                         max(vmem_cap - (8 << 20), 32 << 20)))

    kernel = functools.partial(_mean_vector_kernel, m=m_eff, tm=tm,
                               n_tiles_total=n_tiles_total)
    in_idx = lambda i, k: (0, i * nk + k)
    out_idx = lambda i, k: (i, 0, 0)
    cost = pl.CostEstimate(
        flops=c_eff * m_eff,
        transcendentals=0,
        bytes_accessed=c_eff * m_eff * itemsize + n_split * c_eff * 4,
    )

    def _call(pipeline_mode):
        if pipeline_mode is None:
            in_spec = pl.BlockSpec((c_eff, tm), in_idx)
        else:
            in_spec = pl.BlockSpec((c_eff, tm), in_idx, pipeline_mode=pipeline_mode)
        return pl.pallas_call(
            kernel,
            grid=(n_split, nk),
            in_specs=[in_spec],
            out_specs=pl.BlockSpec((None, c_eff, 1), out_idx),
            out_shape=jax.ShapeDtypeStruct((n_split, c_eff, 1), jnp.float32),
            compiler_params=pltpu.CompilerParams(
                dimension_semantics=("parallel", "arbitrary"),
                vmem_limit_bytes=vmem_limit,
            ),
            cost_estimate=cost,
        )(F)

    try:
        partial_sums = _call(pl.Buffered(nbuf))   # deeper pipelining (v7x win)
    except Exception:
        partial_sums = _call(None)                # default double buffering

    # Fold split / packing partial sums, then divide once by m (torch.mean).
    total = partial_sums.sum(axis=(0, 2)).reshape(c, g).sum(axis=1)   # (C,) fp32
    return (total / m).astype(source_nchw.dtype)


class MeanVector:
    """Mirror of the (parameter-free) PyTorch MeanVector module."""

    def __call__(self, source):
        return mean_vector_pallas(source)


# ----------------------------------------------------------------------------
# Demo / self-check
# ----------------------------------------------------------------------------
if __name__ == "__main__":
    key = jax.random.PRNGKey(0)
    k1, k2, k3, k4 = jax.random.split(key, 4)
    layer = MeanVector()

    # (1) small conv-feature-like map; C<8 exercises the sublane-packing path.
    x1 = jax.random.normal(k1, (1, 4, 16, 16), dtype=jnp.float32)
    g1 = jax.block_until_ready(layer(x1))
    ref1 = jnp.mean(x1.reshape(4, -1), axis=1)
    assert g1.shape == (4,)
    assert jnp.allclose(g1, ref1, rtol=1e-5, atol=1e-6), (g1, ref1)

    # (2) m = 196 (NOT a multiple of 128) -> exercises the masked partial tile.
    x2 = jax.random.normal(k2, (1, 8, 14, 14), dtype=jnp.float32)
    g2 = jax.block_until_ready(layer(x2))
    ref2 = jnp.mean(x2.reshape(8, -1), axis=1)
    assert jnp.allclose(g2, ref2, rtol=1e-5, atol=1e-6), (g2, ref2)

    # (3) bf16 input: native-dtype DMA, fp32 accumulation in-kernel.
    x3 = jax.random.normal(k3, (1, 16, 16, 16), dtype=jnp.bfloat16)
    g3 = jax.block_until_ready(layer(x3))
    ref3 = jnp.mean(x3.astype(jnp.float32).reshape(16, -1), axis=1)
    assert g3.dtype == jnp.bfloat16
    assert jnp.allclose(g3.astype(jnp.float32), ref3, rtol=2e-2, atol=2e-2), (g3, ref3)

    # (4) forced small tiles: multi-tile grid + split-reduction + partial tile.
    x4 = jax.random.normal(k4, (1, 8, 30, 30), dtype=jnp.float32)
    g4 = jax.block_until_ready(mean_vector_pallas(x4, max_tile_m=128))
    ref4 = jnp.mean(x4.reshape(8, -1), axis=1)
    assert jnp.allclose(g4, ref4, rtol=1e-5, atol=1e-6), (g4, ref4)

    print("KERNEL_OK")
</pallas_src>

<mosaic_0001>
module attributes {stable_mosaic.version = 11 : i64} {
  func.func @_mean_vector_kernel(%arg0: i32, %arg1: i32, %arg2: memref<8x128xf32, #tpu.memory_space<vmem>>, %arg3: memref<1x8x1xf32, #tpu.memory_space<vmem>>) attributes {dimension_semantics = [#tpu.dimension_semantics<parallel>, #tpu.dimension_semantics<arbitrary>], iteration_bounds = array<i64: 1, 1>, scalar_prefetch = 0 : i64, scratch_operands = 0 : i64, tpu.core_type = #tpu.core_type<tc>, window_params = [{transform_indices = @transform_0, window_bounds = array<i64: 8, 128>}, {transform_indices = @transform_1, window_bounds = array<i64: 1, 8, 1>}]} {
    %c0_i32 = arith.constant 0 : i32
    %0 = arith.cmpi eq, %arg1, %c0_i32 : i32
    %1 = arith.extui %0 : i1 to i32
    %c0_i32_0 = arith.constant 0 : i32
    %2 = arith.cmpi ne, %1, %c0_i32_0 : i32
    scf.if %2 {
      %cst_8 = arith.constant 0.000000e+00 : f32
      %12 = vector.broadcast %cst_8 : f32 to vector<8x1xf32>
      %c0_9 = arith.constant 0 : index
      %c0_10 = arith.constant 0 : index
      %c0_11 = arith.constant 0 : index
      %13 = vector.load %arg3[%c0_9, %c0_10, %c0_11] : memref<1x8x1xf32, #tpu.memory_space<vmem>>, vector<1x8x1xf32>
      %14 = vector.shape_cast %13 : vector<1x8x1xf32> to vector<8x1xf32>
      %15 = vector.shape_cast %12 : vector<8x1xf32> to vector<1x8x1xf32>
      tpu.vector_store %arg3[%c0_9, %c0_10, %c0_11], %15 {strides = array<i32>} : memref<1x8x1xf32, #tpu.memory_space<vmem>>, vector<1x8x1xf32>,
    } else {
    }
    %c0 = arith.constant 0 : index
    %c0_1 = arith.constant 0 : index
    %3 = vector.load %arg2[%c0, %c0_1] : memref<8x128xf32, #tpu.memory_space<vmem>>, vector<8x128xf32>
    %c0_2 = arith.constant 0 : index
    %c0_3 = arith.constant 0 : index
    %c0_4 = arith.constant 0 : index
    %4 = vector.load %arg3[%c0_2, %c0_3, %c0_4] : memref<1x8x1xf32, #tpu.memory_space<vmem>>, vector<1x8x1xf32>
    %5 = vector.shape_cast %4 : vector<1x8x1xf32> to vector<8x1xf32>
    %cst = arith.constant dense<0.000000e+00> : vector<8xf32>
    %6 = vector.multi_reduction <add>, %3, %cst [1] : vector<8x128xf32> to vector<8xf32>
    %7 = vector.shape_cast %6 : vector<8xf32> to vector<8x1xf32>
    %8 = arith.addf %5, %7 : vector<8x1xf32>
    %c0_5 = arith.constant 0 : index
    %c0_6 = arith.constant 0 : index
    %c0_7 = arith.constant 0 : index
    %9 = vector.load %arg3[%c0_5, %c0_6, %c0_7] : memref<1x8x1xf32, #tpu.memory_space<vmem>>, vector<1x8x1xf32>
    %10 = vector.shape_cast %9 : vector<1x8x1xf32> to vector<8x1xf32>
    %11 = vector.shape_cast %8 : vector<8x1xf32> to vector<1x8x1xf32>
    tpu.vector_store %arg3[%c0_5, %c0_6, %c0_7], %11 {strides = array<i32>} : memref<1x8x1xf32, #tpu.memory_space<vmem>>, vector<1x8x1xf32>,
    return
  }
  func.func @transform_0(%arg0: i32, %arg1: i32) -> (i32, i32) {
    %c1_i32 = arith.constant 1 : i32
    %0 = arith.muli %arg0, %c1_i32 : i32
    %1 = arith.addi %0, %arg1 : i32
    %c0_i32 = arith.constant 0 : i32
    %c0_i32_0 = arith.constant 0 : i32
    return %c0_i32, %1 : i32, i32
  }
  func.func @transform_1(%arg0: i32, %arg1: i32) -> (i32, i32, i32) {
    %c0_i32 = arith.constant 0 : i32
    %c0_i32_0 = arith.constant 0 : i32
    %c0_i32_1 = arith.constant 0 : i32
    return %arg0, %c0_i32, %c0_i32_0 : i32, i32, i32
  }
}

</mosaic_0001>

<bundles_post_ra>
// kernel: tpu_custom_call.1
= control target key start
LH: loop header
LB: loop body
LE: loop exit
PB: predicated region body
PF: predicated region fallthrough
CT: control target
= control target key end

     0   :  { %6 = vsyncpa [#allocation3], 0  ;;  %s66_s6 = smov [#allocation2]   ;;  %s90_s0 = inlined_call_operand.hbm [shape: f32[8,128], index: 0, kind: input, shape index: {}]   ;;  %s91_s1 = inlined_call_operand.vmem [shape: f32[1,8,1], index: 1, kind: output, shape index: {}]  }
   0x1   :  { %s16_s7 = sshll.u32 %s66_s6, 4  ;;  %s17_s7 = int_to_ptr.vmem [resolvable:$true] %s16_s7 }
   0x2   :  { %s52_s8 = scalar_lea.vmem %s17_s7, 128  ;;  %p57_p1 = scmp.lt.s32.totalorder %s17_s7, %s17_s7 }
   0x3   :  { %p53_p0 = scmp.ne.s32.totalorder %s17_s7, %s52_s8  ;;  %p58_p2 = scmp.lt.s32.totalorder %s52_s8, %s52_s8 }
   0x5   :  { %p59_p3 = por %p58_p2, %p57_p1 }
   0x7   :  { %p60_p4 = pnand %p59_p3, %p53_p0 }
   0x9   :  { %63 = shalt.err (!%p60_p4)
}
   0xa   :  { %19 = dma.hbm_to_vmem [thread:$0]  %s90_s0, 128, %s17_s7, [#allocation3]  }
   0xb   :  { %64 = dma.done.wait [#allocation3], 128  }
   0xc   :  { %65 = vsyncadd [#allocation3], 4294967168  ;;  %vm28_vm0 = vcmask 7168   ;;  %v67_v0 = vmov 0.0   ;;  %v30_v1 = vld [vmem:[#allocation2] sm:$0xff] }
   0xd   :  { %29 = vst.msk [vmem:[%s91_s1] sm:$0xff] %vm28_vm0, %v67_v0  ;;  %32 = vadd.xlane.f32.xlu0 %v30_v1 }
  0x14   :  { %v31_v2 = vld [vmem:[%s91_s1] sm:$0xff] }
  0x96   :  { %v33_v3 = vpop.xlane.xlu0 %32 }
  0x97   :  { %v34_v4 = vadd.f32 %v33_v3, %v31_v2 }
  0x99   :  { %36 = vst.msk [vmem:[%s91_s1] sm:$0xff] %vm28_vm0, %v34_v4 }
  0x9a   :  { %41 = vsyncpa [#allocation3], 1 }

</bundles_post_ra>
